<compile_context>
chip_gen: v5e
topology: v5e:2x2
jax: 0.10.0
libtpu: 0.0.40
codegen_flags: <defaults>
</compile_context>

<pallas_src>
import math
from functools import partial

import numpy as np
import jax
import jax.numpy as jnp
from jax.experimental import pallas as pl
from jax.experimental.pallas import tpu as pltpu

BN_EPS = 1e-5
LANE = 128
SUBLANE = 8


def _round_up(x, m):
    return ((x + m - 1) // m) * m


def _vmem():
    # tiny full-array blocks, auto-DMA'd into VMEM
    return pl.BlockSpec(memory_space=pltpu.MemorySpace.VMEM)


# ------------------------------- fused kernel -----------------------------------
def _fused_kernel(x_ref, w_ref, p_ref, enc_ref, dec_ref, *,
                  enc_layers, dec_layers, dec_last, cbam, B, C, N, F_enc, F_dec):
    O = cbam["O"]
    CN = C * N
    inv_b = 1.0 / B

    def wmat(off, din, dout):
        # static window into the packed bf16 weight slab
        return w_ref[0:din, off:off + dout]

    def prow(off, width, row=0):
        return p_ref[row:row + 1, off:off + width]           # f32 (1, width)

    def mm(x, off, din, dout):
        # bf16 MXU fast path, f32 accumulate
        return jnp.dot(x.astype(jnp.bfloat16), wmat(off, din, dout),
                       preferred_element_type=jnp.float32)

    def lin_bn_relu(x, spec):
        w_off, din, dout, p_off = spec
        y = mm(x, w_off, din, dout) + prow(p_off, dout, 0)
        # one-pass batch stats (torch train-mode BN, biased var); the two
        # reductions are fused into ONE cross-sublane reduce over [y | y*y]
        s = jnp.sum(jnp.concatenate([y, y * y], axis=1), axis=0, keepdims=True) * inv_b
        mean = s[:, :dout]
        var = jnp.maximum(s[:, dout:] - mean * mean, 0.0)
        yn = (y - mean) * jax.lax.rsqrt(var + BN_EPS)
        return jnp.maximum(yn * prow(p_off, dout, 1) + prow(p_off, dout, 2), 0.0)

    # ------------------------------ encoder ------------------------------
    x = x_ref[...]
    for spec in enc_layers:
        x = lin_bn_relu(x, spec)
    encoder = x                                               # (B, CN)

    # -------------------------------- CBAM --------------------------------
    # channel attention: sigmoid(mlp(avgpool) + mlp(maxpool)), expanded over features
    a_avg = jnp.maximum(mm(encoder, cbam["w1avg"], CN, O) + prow(cbam["b1"], O), 0.0)
    w1 = p_ref[:, cbam["w1"]:cbam["w1"] + O]                  # (C=3, O) f32, max-pool MLP-1
    acc = None
    for c in range(C):  # max-pool path as broadcast outer products (no lane concat)
        mc = jnp.max(encoder[:, c * N:(c + 1) * N], axis=1, keepdims=True)   # (B, 1)
        term = mc * w1[c:c + 1, :]
        acc = term if acc is None else acc + term
    a_max = jnp.maximum(acc + prow(cbam["b1"], O), 0.0)
    ca_full = jax.nn.sigmoid(mm(a_avg + a_max, cbam["w2e"], O, CN) + prow(cbam["b2e"], CN))
    x_ca = encoder * ca_full                                  # (B, CN)

    # `encoder` is dead past this point -> store it now (ends its vreg live range
    # before the decoder; single lane-dense 128-wide store)
    enc_pad = enc_ref.shape[1] - F_enc
    enc_ref[...] = (jnp.concatenate([encoder, jnp.zeros((B, enc_pad), jnp.float32)], axis=1)
                    if enc_pad else encoder)

    # spatial attention: avg + max conv paths fused into ONE matmul on [x_ca | cmax]
    cmax = x_ca[:, 0:N]
    for c in range(1, C):
        cmax = jnp.maximum(cmax, x_ca[:, c * N:(c + 1) * N])
    sa_in = jnp.concatenate([x_ca, cmax], axis=1)             # (B, CN + N)
    sa_full = jax.nn.sigmoid(mm(sa_in, cbam["wsa"], CN + N, CN) + prow(cbam["sab"], 1))
    x2 = x_ca * sa_full

    # feature conv (C->16, k=3, same padding) folded dense + ReLU, FC back to F_enc
    h = jnp.maximum(mm(x2, cbam["cw"], CN, O * N) + prow(cbam["cb"], O * N), 0.0)
    atten = mm(h, cbam["fcw"], O * N, F_enc) + prow(cbam["fcb"], F_enc)

    # ------------------------------ decoder ------------------------------
    y = atten
    for spec in dec_layers:
        y = lin_bn_relu(y, spec)
    w_off, din, dout, p_off = dec_last
    decoder = jax.nn.sigmoid(mm(y, w_off, din, dout) + prow(p_off, dout))
    dec_pad = dec_ref.shape[1] - F_dec
    dec_ref[...] = (jnp.concatenate([decoder, jnp.zeros((B, dec_pad), jnp.float32)], axis=1)
                    if dec_pad else decoder)


def _fused_forward(features, wslab, pslab, *, kern_kwargs, F_enc, F_dec,
                   enc_out_w, dec_out_w, flops_per_row, trans_per_row,
                   param_bytes, vmem_limit_bytes):
    B = features.shape[0]
    kern = partial(_fused_kernel, B=B, **kern_kwargs)
    out_shape = (jax.ShapeDtypeStruct((B, enc_out_w), jnp.float32),
                 jax.ShapeDtypeStruct((B, dec_out_w), jnp.float32))
    bytes_accessed = int(param_bytes + features.size * features.dtype.itemsize
                         + B * (enc_out_w + dec_out_w) * 4)
    enc_p, dec_p = pl.pallas_call(
        kern,
        out_shape=out_shape,
        in_specs=[_vmem(), _vmem(), _vmem()],
        out_specs=(_vmem(), _vmem()),
        compiler_params=pltpu.CompilerParams(vmem_limit_bytes=int(vmem_limit_bytes)),
        cost_estimate=pl.CostEstimate(flops=int(B * flops_per_row),
                                      transcendentals=int(B * trans_per_row),
                                      bytes_accessed=bytes_accessed),
    )(features, wslab, pslab)
    return enc_p[:, :F_enc], dec_p[:, :F_dec]


# ---------------------------------- glue / params -------------------------------
def _init_linear(key, din, dout):
    # PyTorch nn.Linear default init: U(-1/sqrt(fan_in), 1/sqrt(fan_in)).
    kw, kb = jax.random.split(key)
    bound = 1.0 / math.sqrt(din)
    w = jax.random.uniform(kw, (din, dout), jnp.float32, -bound, bound)  # (in, out) = W.T
    b = jax.random.uniform(kb, (1, dout), jnp.float32, -bound, bound)
    return np.asarray(w), np.asarray(b)


def _fold_conv1d_weight(w, n):
    """Fold a same-padded 1-D conv weight (O, Cin, K) into a dense (Cin*n, O*n)
    matrix so y_flat = x_flat @ W implements the conv (flatten f = c*n + pos)."""
    out_c, in_c, K = w.shape
    pad = K // 2
    w = np.asarray(w)
    dense = np.zeros((in_c * n, out_c * n), np.float32)
    for o in range(out_c):
        for c in range(in_c):
            for n_out in range(n):
                for k in range(K):
                    n_in = n_out + k - pad
                    if 0 <= n_in < n:
                        dense[c * n + n_in, o * n + n_out] = w[o, c, k]
    return dense


class AttenDAEPallas:
    # TODO(synk): ConvAttention.CBAM source was not provided; implemented as a
    # standard CBAM (channel + spatial attention, Cin->16 feature conv, FC back
    # to Out_Feature_size) using the constructor hyper-parameters of the module.

    CBAM_IN_CHANNELS = 3
    CBAM_OUT_CHANNELS = 16
    CBAM_SPATIAL_K = 3
    CBAM_CONV_K = 3

    def __init__(self, Linears_F, Linears_L, key):
        keys = iter(jax.random.split(key, 64))

        w_parts, p_parts = [], []
        w_cursor, p_cursor = [0], [0]
        mm_dims = []

        def add_w(arr):
            arr = np.asarray(arr, np.float32)
            off = w_cursor[0]
            w_parts.append((off, arr))
            w_cursor[0] += arr.shape[1]
            mm_dims.append(arr.shape)
            return off

        def add_p(arr):
            arr = np.asarray(arr, np.float32)
            if arr.shape[0] < 3:
                arr = np.concatenate(
                    [arr, np.zeros((3 - arr.shape[0], arr.shape[1]), np.float32)], 0)
            off = p_cursor[0]
            p_parts.append((off, arr))
            p_cursor[0] += arr.shape[1]
            return off

        def add_bn(b):
            # rows: [bias; gamma(=1); beta(=0)]  (fresh torch BatchNorm1d affine)
            return add_p(np.concatenate([b, np.ones_like(b), np.zeros_like(b)], 0))

        # -------------- encoder: [Linear, BatchNorm1d, ReLU] per consecutive pair -----
        enc_layers = []
        for i in range(len(Linears_F) - 1):
            din, dout = Linears_F[i], Linears_F[i + 1]
            w, b = _init_linear(next(keys), din, dout)
            enc_layers.append((add_w(w), din, dout, add_bn(b)))

        # ------------------------------------ CBAM ------------------------------------
        # CBAM(in_channels=3, out_channels=16, Feature_Num=F, Out_Feature_size=F)
        F = Linears_F[-1]
        C = self.CBAM_IN_CHANNELS
        N = math.ceil(F / C)                 # == Feature_num computed in forward
        assert C * N == F, "encoder width must be divisible by 3 for the CBAM reshape"
        O = self.CBAM_OUT_CHANNELS
        CN = C * N

        caw1, cab1 = _init_linear(next(keys), C, O)       # (C,16), (1,16)
        caw2, cab2 = _init_linear(next(keys), O, C)       # (16,C), (1,C)

        # constant pooling / expansion matrices, folded into the MXU weights below
        P_avg = np.zeros((CN, C), np.float32)   # per-channel avg pool
        E_ca = np.zeros((C, CN), np.float32)    # expand channel attn over features
        E_sa = np.zeros((N, CN), np.float32)    # tile spatial attn over channels
        P_cav = np.zeros((CN, N), np.float32)   # cross-channel avg
        for c in range(C):
            for n in range(N):
                P_avg[c * N + n, c] = 1.0 / N
                E_ca[c, c * N + n] = 1.0
                E_sa[n, c * N + n] = 1.0
                P_cav[c * N + n, n] = 1.0 / C

        bnd = 1.0 / math.sqrt(2 * self.CBAM_SPATIAL_K)
        k1, k2 = jax.random.split(next(keys))
        saw_raw = jax.random.uniform(k1, (1, 2, self.CBAM_SPATIAL_K), jnp.float32, -bnd, bnd)
        sab = np.asarray(jax.random.uniform(k2, (1, 1), jnp.float32, -bnd, bnd))
        saw = _fold_conv1d_weight(saw_raw, N)             # (2N, N): rows [avg ; max]
        wsa_comb = np.vstack([P_cav @ saw[:N] @ E_sa,     # (CN, CN) avg path (x-chan avg folded)
                              saw[N:] @ E_sa])            # (N,  CN) max path -> (CN+N, CN)

        bnd = 1.0 / math.sqrt(C * self.CBAM_CONV_K)
        k3, k4 = jax.random.split(next(keys))
        cw_raw = jax.random.uniform(k3, (O, C, self.CBAM_CONV_K), jnp.float32, -bnd, bnd)
        cb_raw = np.asarray(jax.random.uniform(k4, (O,), jnp.float32, -bnd, bnd))
        cw = _fold_conv1d_weight(cw_raw, N)               # (CN, O*N)
        cb = np.repeat(cb_raw, N)[None, :]                # (1, O*N)

        fcw, fcb = _init_linear(next(keys), O * N, F)     # Out_Feature_size = F

        cbam = {
            "O": O,
            "w1avg": add_w(P_avg @ caw1),                 # (CN, 16): avg-pool folded into MLP-1
            "w1": add_p(caw1),                            # (3, 16) kept f32 in pslab (VPU path)
            "b1": add_p(cab1),                            # (1, 16)
            "w2e": add_w(caw2 @ E_ca),                    # (16, CN): MLP-2 expanded per feature
            "b2e": add_p(2.0 * (cab2 @ E_ca)),            # mlp(avg)+mlp(max) -> 2*b2
            "wsa": add_w(wsa_comb),                       # (CN+N, CN): fused avg|max spatial conv
            "sab": add_p(sab),                            # (1, 1) spatial conv bias
            "cw": add_w(cw),                              # (CN, O*N) feature conv, dense fold
            "cb": add_p(cb),                              # (1, O*N)
            "fcw": add_w(fcw),                            # (O*N, F)
            "fcb": add_p(fcb),                            # (1, F)
        }

        # ---------- decoder: [Linear, BN, ReLU] * (len-2), then [Linear, Sigmoid] -----
        dec_layers = []
        for i in range(len(Linears_L) - 2):
            din, dout = Linears_L[i], Linears_L[i + 1]
            w, b = _init_linear(next(keys), din, dout)
            dec_layers.append((add_w(w), din, dout, add_bn(b)))
        wl, bl = _init_linear(next(keys), Linears_L[-2], Linears_L[-1])
        dec_last = (add_w(wl), Linears_L[-2], Linears_L[-1], add_p(bl))

        # -------------------- pack the two slabs (wslab bf16, pslab f32) --------------
        rows = _round_up(max(a.shape[0] for _, a in w_parts), SUBLANE)
        wcols = _round_up(w_cursor[0], LANE)
        W = np.zeros((rows, wcols), np.float32)
        for off, a in w_parts:
            W[:a.shape[0], off:off + a.shape[1]] = a
        pcols = _round_up(p_cursor[0], LANE)
        P = np.zeros((3, pcols), np.float32)
        for off, a in p_parts:
            P[:, off:off + a.shape[1]] = a
        self._wslab = jnp.asarray(W, dtype=jnp.bfloat16)   # halves weight DMA bytes / VMEM
        self._pslab = jnp.asarray(P, dtype=jnp.float32)

        F_dec = Linears_L[-1]
        param_bytes = W.size * 2 + P.size * 4
        flops_per_row = 2 * sum(int(d0) * int(d1) for d0, d1 in mm_dims)
        trans_per_row = 2 * CN + F_dec + 8                 # sigmoids + rsqrt slack
        vmem_limit = max(16 << 20, 8 * param_bytes)

        self._fwd = jax.jit(partial(
            _fused_forward,
            kern_kwargs=dict(enc_layers=enc_layers, dec_layers=dec_layers,
                             dec_last=dec_last, cbam=cbam,
                             C=C, N=N, F_enc=F, F_dec=F_dec),
            F_enc=F, F_dec=F_dec,
            enc_out_w=_round_up(F, LANE), dec_out_w=_round_up(F_dec, LANE),
            flops_per_row=flops_per_row, trans_per_row=trans_per_row,
            param_bytes=param_bytes, vmem_limit_bytes=vmem_limit))

    def __call__(self, features):
        return self._fwd(features, self._wslab, self._pslab)


if __name__ == "__main__":
    Linears_F = [32, 24, 12]   # encoder widths
    Linears_L = [12, 24, 32]   # decoder widths (input must equal CBAM Out_Feature_size)
    B = 8

    key = jax.random.PRNGKey(0)
    k_in, k_param = jax.random.split(key)
    model = AttenDAEPallas(Linears_F, Linears_L, k_param)

    features = jax.random.uniform(k_in, (B, Linears_F[0]), jnp.float32)
    enc, dec = model(features)
    jax.block_until_ready((enc, dec))

    assert enc.shape == (B, Linears_F[-1])
    assert dec.shape == (B, Linears_L[-1])
    assert bool(jnp.all(jnp.isfinite(enc))) and bool(jnp.all(jnp.isfinite(dec)))
    assert bool(jnp.all(dec >= 0.0)) and bool(jnp.all(dec <= 1.0))   # sigmoid output
    print("KERNEL_OK")
</pallas_src>

<mosaic_0001>
module attributes {stable_mosaic.version = 11 : i64} {
  func.func @_fused_kernel(%arg0: memref<8x32xf32, #tpu.memory_space<vmem>>, %arg1: memref<64x256xbf16, #tpu.memory_space<vmem>>, %arg2: memref<3x256xf32, #tpu.memory_space<vmem>>, %arg3: memref<8x128xf32, #tpu.memory_space<vmem>>, %arg4: memref<8x128xf32, #tpu.memory_space<vmem>>) attributes {dimension_semantics = [], scalar_prefetch = 0 : i64, scratch_operands = 0 : i64, tpu.core_type = #tpu.core_type<tc>} {
    %c0 = arith.constant 0 : index
    %c0_0 = arith.constant 0 : index
    %0 = vector.load %arg0[%c0, %c0_0] : memref<8x32xf32, #tpu.memory_space<vmem>>, vector<8x32xf32>
    %1 = arith.truncf %0 : vector<8x32xf32> to vector<8x32xbf16>
    %c0_1 = arith.constant 0 : index
    %c0_2 = arith.constant 0 : index
    %2 = vector.load %arg1[%c0_1, %c0_2] : memref<64x256xbf16, #tpu.memory_space<vmem>>, vector<32x24xbf16>
    %cst = arith.constant dense<0.000000e+00> : vector<8x24xf32>
    %3 = tpu.matmul %1, %2, %cst {dimension_numbers = #tpu.dot_dimension_numbers<[1], [0], [0], [1], [0, 0, 1, 1], [], []>} : vector<8x32xbf16>, vector<32x24xbf16>, vector<8x24xf32> -> vector<8x24xf32>
    %c0_3 = arith.constant 0 : index
    %c0_4 = arith.constant 0 : index
    %4 = vector.load %arg2[%c0_3, %c0_4] : memref<3x256xf32, #tpu.memory_space<vmem>>, vector<1x24xf32>
    %5 = vector.broadcast %4 : vector<1x24xf32> to vector<8x24xf32>
    %6 = arith.addf %3, %5 : vector<8x24xf32>
    %7 = arith.mulf %6, %6 : vector<8x24xf32>
    %8 = tpu.concatenate %6, %7 in 1 : vector<8x24xf32>, vector<8x24xf32> -> vector<8x48xf32>
    %cst_5 = arith.constant dense<0.000000e+00> : vector<48xf32>
    %9 = vector.multi_reduction <add>, %8, %cst_5 [0] : vector<8x48xf32> to vector<48xf32>
    %10 = vector.shape_cast %9 : vector<48xf32> to vector<1x48xf32>
    %cst_6 = arith.constant 1.250000e-01 : f32
    %11 = vector.broadcast %cst_6 : f32 to vector<1x48xf32>
    %12 = arith.mulf %10, %11 : vector<1x48xf32>
    %13 = vector.extract_strided_slice %12 {offsets = [0, 0], sizes = [1, 24], strides = [1, 1]} : vector<1x48xf32> to vector<1x24xf32>
    %14 = vector.extract_strided_slice %12 {offsets = [0, 24], sizes = [1, 24], strides = [1, 1]} : vector<1x48xf32> to vector<1x24xf32>
    %15 = arith.mulf %13, %13 : vector<1x24xf32>
    %16 = arith.subf %14, %15 : vector<1x24xf32>
    %cst_7 = arith.constant 0.000000e+00 : f32
    %17 = vector.broadcast %cst_7 : f32 to vector<1x24xf32>
    %18 = arith.maximumf %16, %17 : vector<1x24xf32>
    %19 = vector.broadcast %13 : vector<1x24xf32> to vector<8x24xf32>
    %20 = arith.subf %6, %19 : vector<8x24xf32>
    %cst_8 = arith.constant 9.99999974E-6 : f32
    %21 = vector.broadcast %cst_8 : f32 to vector<1x24xf32>
    %22 = arith.addf %18, %21 : vector<1x24xf32>
    %23 = math.rsqrt %22 : vector<1x24xf32>
    %24 = vector.broadcast %23 : vector<1x24xf32> to vector<8x24xf32>
    %25 = arith.mulf %20, %24 : vector<8x24xf32>
    %c1 = arith.constant 1 : index
    %c0_9 = arith.constant 0 : index
    %26 = vector.load %arg2[%c1, %c0_9] : memref<3x256xf32, #tpu.memory_space<vmem>>, vector<1x24xf32>
    %27 = vector.broadcast %26 : vector<1x24xf32> to vector<8x24xf32>
    %28 = arith.mulf %25, %27 : vector<8x24xf32>
    %c2 = arith.constant 2 : index
    %c0_10 = arith.constant 0 : index
    %29 = vector.load %arg2[%c2, %c0_10] : memref<3x256xf32, #tpu.memory_space<vmem>>, vector<1x24xf32>
    %30 = vector.broadcast %29 : vector<1x24xf32> to vector<8x24xf32>
    %31 = arith.addf %28, %30 : vector<8x24xf32>
    %cst_11 = arith.constant 0.000000e+00 : f32
    %32 = vector.broadcast %cst_11 : f32 to vector<8x24xf32>
    %33 = arith.maximumf %31, %32 : vector<8x24xf32>
    %34 = arith.truncf %33 : vector<8x24xf32> to vector<8x24xbf16>
    %c0_12 = arith.constant 0 : index
    %c24 = arith.constant 24 : index
    %35 = vector.load %arg1[%c0_12, %c24] : memref<64x256xbf16, #tpu.memory_space<vmem>>, vector<24x12xbf16>
    %cst_13 = arith.constant dense<0.000000e+00> : vector<8x12xf32>
    %36 = tpu.matmul %34, %35, %cst_13 {dimension_numbers = #tpu.dot_dimension_numbers<[1], [0], [0], [1], [0, 0, 1, 1], [], []>} : vector<8x24xbf16>, vector<24x12xbf16>, vector<8x12xf32> -> vector<8x12xf32>
    %c0_14 = arith.constant 0 : index
    %c24_15 = arith.constant 24 : index
    %37 = vector.load %arg2[%c0_14, %c24_15] : memref<3x256xf32, #tpu.memory_space<vmem>>, vector<1x12xf32>
    %38 = vector.broadcast %37 : vector<1x12xf32> to vector<8x12xf32>
    %39 = arith.addf %36, %38 : vector<8x12xf32>
    %40 = arith.mulf %39, %39 : vector<8x12xf32>
    %41 = tpu.concatenate %39, %40 in 1 : vector<8x12xf32>, vector<8x12xf32> -> vector<8x24xf32>
    %cst_16 = arith.constant dense<0.000000e+00> : vector<24xf32>
    %42 = vector.multi_reduction <add>, %41, %cst_16 [0] : vector<8x24xf32> to vector<24xf32>
    %43 = vector.shape_cast %42 : vector<24xf32> to vector<1x24xf32>
    %cst_17 = arith.constant 1.250000e-01 : f32
    %44 = vector.broadcast %cst_17 : f32 to vector<1x24xf32>
    %45 = arith.mulf %43, %44 : vector<1x24xf32>
    %46 = vector.extract_strided_slice %45 {offsets = [0, 0], sizes = [1, 12], strides = [1, 1]} : vector<1x24xf32> to vector<1x12xf32>
    %47 = vector.extract_strided_slice %45 {offsets = [0, 12], sizes = [1, 12], strides = [1, 1]} : vector<1x24xf32> to vector<1x12xf32>
    %48 = arith.mulf %46, %46 : vector<1x12xf32>
    %49 = arith.subf %47, %48 : vector<1x12xf32>
    %cst_18 = arith.constant 0.000000e+00 : f32
    %50 = vector.broadcast %cst_18 : f32 to vector<1x12xf32>
    %51 = arith.maximumf %49, %50 : vector<1x12xf32>
    %52 = vector.broadcast %46 : vector<1x12xf32> to vector<8x12xf32>
    %53 = arith.subf %39, %52 : vector<8x12xf32>
    %cst_19 = arith.constant 9.99999974E-6 : f32
    %54 = vector.broadcast %cst_19 : f32 to vector<1x12xf32>
    %55 = arith.addf %51, %54 : vector<1x12xf32>
    %56 = math.rsqrt %55 : vector<1x12xf32>
    %57 = vector.broadcast %56 : vector<1x12xf32> to vector<8x12xf32>
    %58 = arith.mulf %53, %57 : vector<8x12xf32>
    %c1_20 = arith.constant 1 : index
    %c24_21 = arith.constant 24 : index
    %59 = vector.load %arg2[%c1_20, %c24_21] : memref<3x256xf32, #tpu.memory_space<vmem>>, vector<1x12xf32>
    %60 = vector.broadcast %59 : vector<1x12xf32> to vector<8x12xf32>
    %61 = arith.mulf %58, %60 : vector<8x12xf32>
    %c2_22 = arith.constant 2 : index
    %c24_23 = arith.constant 24 : index
    %62 = vector.load %arg2[%c2_22, %c24_23] : memref<3x256xf32, #tpu.memory_space<vmem>>, vector<1x12xf32>
    %63 = vector.broadcast %62 : vector<1x12xf32> to vector<8x12xf32>
    %64 = arith.addf %61, %63 : vector<8x12xf32>
    %cst_24 = arith.constant 0.000000e+00 : f32
    %65 = vector.broadcast %cst_24 : f32 to vector<8x12xf32>
    %66 = arith.maximumf %64, %65 : vector<8x12xf32>
    %67 = arith.truncf %66 : vector<8x12xf32> to vector<8x12xbf16>
    %c0_25 = arith.constant 0 : index
    %c36 = arith.constant 36 : index
    %68 = vector.load %arg1[%c0_25, %c36] : memref<64x256xbf16, #tpu.memory_space<vmem>>, vector<12x16xbf16>
    %cst_26 = arith.constant dense<0.000000e+00> : vector<8x16xf32>
    %69 = tpu.matmul %67, %68, %cst_26 {dimension_numbers = #tpu.dot_dimension_numbers<[1], [0], [0], [1], [0, 0, 1, 1], [], []>} : vector<8x12xbf16>, vector<12x16xbf16>, vector<8x16xf32> -> vector<8x16xf32>
    %c0_27 = arith.constant 0 : index
    %c52 = arith.constant 52 : index
    %70 = vector.load %arg2[%c0_27, %c52] : memref<3x256xf32, #tpu.memory_space<vmem>>, vector<1x16xf32>
    %71 = vector.broadcast %70 : vector<1x16xf32> to vector<8x16xf32>
    %72 = arith.addf %69, %71 : vector<8x16xf32>
    %cst_28 = arith.constant 0.000000e+00 : f32
    %73 = vector.broadcast %cst_28 : f32 to vector<8x16xf32>
    %74 = arith.maximumf %72, %73 : vector<8x16xf32>
    %c0_29 = arith.constant 0 : index
    %c36_30 = arith.constant 36 : index
    %75 = vector.load %arg2[%c0_29, %c36_30] : memref<3x256xf32, #tpu.memory_space<vmem>>, vector<3x16xf32>
    %76 = vector.extract_strided_slice %66 {offsets = [0, 0], sizes = [8, 4], strides = [1, 1]} : vector<8x12xf32> to vector<8x4xf32>
    %cst_31 = arith.constant dense<0xFF800000> : vector<8xf32>
    %77 = vector.multi_reduction <maximumf>, %76, %cst_31 [1] : vector<8x4xf32> to vector<8xf32>
    %78 = vector.shape_cast %77 : vector<8xf32> to vector<8x1xf32>
    %79 = vector.extract_strided_slice %75 {offsets = [0, 0], sizes = [1, 16], strides = [1, 1]} : vector<3x16xf32> to vector<1x16xf32>
    %80 = vector.broadcast %78 : vector<8x1xf32> to vector<8x16xf32>
    %81 = vector.broadcast %79 : vector<1x16xf32> to vector<8x16xf32>
    %82 = arith.mulf %80, %81 : vector<8x16xf32>
    %83 = vector.extract_strided_slice %66 {offsets = [0, 4], sizes = [8, 4], strides = [1, 1]} : vector<8x12xf32> to vector<8x4xf32>
    %cst_32 = arith.constant dense<0xFF800000> : vector<8xf32>
    %84 = vector.multi_reduction <maximumf>, %83, %cst_32 [1] : vector<8x4xf32> to vector<8xf32>
    %85 = vector.shape_cast %84 : vector<8xf32> to vector<8x1xf32>
    %86 = vector.extract_strided_slice %75 {offsets = [1, 0], sizes = [1, 16], strides = [1, 1]} : vector<3x16xf32> to vector<1x16xf32>
    %87 = vector.broadcast %85 : vector<8x1xf32> to vector<8x16xf32>
    %88 = vector.broadcast %86 : vector<1x16xf32> to vector<8x16xf32>
    %89 = arith.mulf %87, %88 : vector<8x16xf32>
    %90 = arith.addf %82, %89 : vector<8x16xf32>
    %91 = vector.extract_strided_slice %66 {offsets = [0, 8], sizes = [8, 4], strides = [1, 1]} : vector<8x12xf32> to vector<8x4xf32>
    %cst_33 = arith.constant dense<0xFF800000> : vector<8xf32>
    %92 = vector.multi_reduction <maximumf>, %91, %cst_33 [1] : vector<8x4xf32> to vector<8xf32>
    %93 = vector.shape_cast %92 : vector<8xf32> to vector<8x1xf32>
    %94 = vector.extract_strided_slice %75 {offsets = [2, 0], sizes = [1, 16], strides = [1, 1]} : vector<3x16xf32> to vector<1x16xf32>
    %95 = vector.broadcast %93 : vector<8x1xf32> to vector<8x16xf32>
    %96 = vector.broadcast %94 : vector<1x16xf32> to vector<8x16xf32>
    %97 = arith.mulf %95, %96 : vector<8x16xf32>
    %98 = arith.addf %90, %97 : vector<8x16xf32>
    %c0_34 = arith.constant 0 : index
    %c52_35 = arith.constant 52 : index
    %99 = vector.load %arg2[%c0_34, %c52_35] : memref<3x256xf32, #tpu.memory_space<vmem>>, vector<1x16xf32>
    %100 = vector.broadcast %99 : vector<1x16xf32> to vector<8x16xf32>
    %101 = arith.addf %98, %100 : vector<8x16xf32>
    %cst_36 = arith.constant 0.000000e+00 : f32
    %102 = vector.broadcast %cst_36 : f32 to vector<8x16xf32>
    %103 = arith.maximumf %101, %102 : vector<8x16xf32>
    %104 = arith.addf %74, %103 : vector<8x16xf32>
    %105 = arith.truncf %104 : vector<8x16xf32> to vector<8x16xbf16>
    %c0_37 = arith.constant 0 : index
    %c52_38 = arith.constant 52 : index
    %106 = vector.load %arg1[%c0_37, %c52_38] : memref<64x256xbf16, #tpu.memory_space<vmem>>, vector<16x12xbf16>
    %cst_39 = arith.constant dense<0.000000e+00> : vector<8x12xf32>
    %107 = tpu.matmul %105, %106, %cst_39 {dimension_numbers = #tpu.dot_dimension_numbers<[1], [0], [0], [1], [0, 0, 1, 1], [], []>} : vector<8x16xbf16>, vector<16x12xbf16>, vector<8x12xf32> -> vector<8x12xf32>
    %c0_40 = arith.constant 0 : index
    %c68 = arith.constant 68 : index
    %108 = vector.load %arg2[%c0_40, %c68] : memref<3x256xf32, #tpu.memory_space<vmem>>, vector<1x12xf32>
    %109 = vector.broadcast %108 : vector<1x12xf32> to vector<8x12xf32>
    %110 = arith.addf %107, %109 : vector<8x12xf32>
    %111 = arith.negf %110 : vector<8x12xf32>
    %112 = math.exp %111 : vector<8x12xf32>
    %cst_41 = arith.constant 1.000000e+00 : f32
    %113 = vector.broadcast %cst_41 : f32 to vector<8x12xf32>
    %114 = arith.addf %113, %112 : vector<8x12xf32>
    %115 = arith.divf %113, %114 : vector<8x12xf32>
    %116 = arith.mulf %66, %115 : vector<8x12xf32>
    %cst_42 = arith.constant 0.000000e+00 : f32
    %117 = vector.broadcast %cst_42 : f32 to vector<8x116xf32>
    %118 = tpu.concatenate %66, %117 in 1 : vector<8x12xf32>, vector<8x116xf32> -> vector<8x128xf32>
    %c0_43 = arith.constant 0 : index
    %c0_44 = arith.constant 0 : index
    %119 = vector.load %arg3[%c0_43, %c0_44] : memref<8x128xf32, #tpu.memory_space<vmem>>, vector<8x128xf32>
    tpu.vector_store %arg3[%c0_43, %c0_44], %118 {strides = array<i32>} : memref<8x128xf32, #tpu.memory_space<vmem>>, vector<8x128xf32>,
    %120 = vector.extract_strided_slice %116 {offsets = [0, 0], sizes = [8, 4], strides = [1, 1]} : vector<8x12xf32> to vector<8x4xf32>
    %121 = vector.extract_strided_slice %116 {offsets = [0, 4], sizes = [8, 4], strides = [1, 1]} : vector<8x12xf32> to vector<8x4xf32>
    %122 = arith.maximumf %120, %121 : vector<8x4xf32>
    %123 = vector.extract_strided_slice %116 {offsets = [0, 8], sizes = [8, 4], strides = [1, 1]} : vector<8x12xf32> to vector<8x4xf32>
    %124 = arith.maximumf %122, %123 : vector<8x4xf32>
    %125 = tpu.concatenate %116, %124 in 1 : vector<8x12xf32>, vector<8x4xf32> -> vector<8x16xf32>
    %126 = arith.truncf %125 : vector<8x16xf32> to vector<8x16xbf16>
    %c0_45 = arith.constant 0 : index
    %c64 = arith.constant 64 : index
    %127 = vector.load %arg1[%c0_45, %c64] : memref<64x256xbf16, #tpu.memory_space<vmem>>, vector<16x12xbf16>
    %cst_46 = arith.constant dense<0.000000e+00> : vector<8x12xf32>
    %128 = tpu.matmul %126, %127, %cst_46 {dimension_numbers = #tpu.dot_dimension_numbers<[1], [0], [0], [1], [0, 0, 1, 1], [], []>} : vector<8x16xbf16>, vector<16x12xbf16>, vector<8x12xf32> -> vector<8x12xf32>
    %c0_47 = arith.constant 0 : index
    %c80 = arith.constant 80 : index
    %129 = vector.load %arg2[%c0_47, %c80] : memref<3x256xf32, #tpu.memory_space<vmem>>, vector<1x1xf32>
    %130 = vector.broadcast %129 : vector<1x1xf32> to vector<8x12xf32>
    %131 = arith.addf %128, %130 : vector<8x12xf32>
    %132 = arith.negf %131 : vector<8x12xf32>
    %133 = math.exp %132 : vector<8x12xf32>
    %cst_48 = arith.constant 1.000000e+00 : f32
    %134 = vector.broadcast %cst_48 : f32 to vector<8x12xf32>
    %135 = arith.addf %134, %133 : vector<8x12xf32>
    %136 = arith.divf %134, %135 : vector<8x12xf32>
    %137 = arith.mulf %116, %136 : vector<8x12xf32>
    %138 = arith.truncf %137 : vector<8x12xf32> to vector<8x12xbf16>
    %c0_49 = arith.constant 0 : index
    %c76 = arith.constant 76 : index
    %139 = vector.load %arg1[%c0_49, %c76] : memref<64x256xbf16, #tpu.memory_space<vmem>>, vector<12x64xbf16>
    %cst_50 = arith.constant dense<0.000000e+00> : vector<8x64xf32>
    %140 = tpu.matmul %138, %139, %cst_50 {dimension_numbers = #tpu.dot_dimension_numbers<[1], [0], [0], [1], [0, 0, 1, 1], [], []>} : vector<8x12xbf16>, vector<12x64xbf16>, vector<8x64xf32> -> vector<8x64xf32>
    %c0_51 = arith.constant 0 : index
    %c81 = arith.constant 81 : index
    %141 = vector.load %arg2[%c0_51, %c81] : memref<3x256xf32, #tpu.memory_space<vmem>>, vector<1x64xf32>
    %142 = vector.broadcast %141 : vector<1x64xf32> to vector<8x64xf32>
    %143 = arith.addf %140, %142 : vector<8x64xf32>
    %cst_52 = arith.constant 0.000000e+00 : f32
    %144 = vector.broadcast %cst_52 : f32 to vector<8x64xf32>
    %145 = arith.maximumf %143, %144 : vector<8x64xf32>
    %146 = arith.truncf %145 : vector<8x64xf32> to vector<8x64xbf16>
    %c0_53 = arith.constant 0 : index
    %c140 = arith.constant 140 : index
    %147 = vector.load %arg1[%c0_53, %c140] : memref<64x256xbf16, #tpu.memory_space<vmem>>, vector<64x12xbf16>
    %cst_54 = arith.constant dense<0.000000e+00> : vector<8x12xf32>
    %148 = tpu.matmul %146, %147, %cst_54 {dimension_numbers = #tpu.dot_dimension_numbers<[1], [0], [0], [1], [0, 0, 1, 1], [], []>} : vector<8x64xbf16>, vector<64x12xbf16>, vector<8x12xf32> -> vector<8x12xf32>
    %c0_55 = arith.constant 0 : index
    %c145 = arith.constant 145 : index
    %149 = vector.load %arg2[%c0_55, %c145] : memref<3x256xf32, #tpu.memory_space<vmem>>, vector<1x12xf32>
    %150 = vector.broadcast %149 : vector<1x12xf32> to vector<8x12xf32>
    %151 = arith.addf %148, %150 : vector<8x12xf32>
    %152 = arith.truncf %151 : vector<8x12xf32> to vector<8x12xbf16>
    %c0_56 = arith.constant 0 : index
    %c152 = arith.constant 152 : index
    %153 = vector.load %arg1[%c0_56, %c152] : memref<64x256xbf16, #tpu.memory_space<vmem>>, vector<12x24xbf16>
    %cst_57 = arith.constant dense<0.000000e+00> : vector<8x24xf32>
    %154 = tpu.matmul %152, %153, %cst_57 {dimension_numbers = #tpu.dot_dimension_numbers<[1], [0], [0], [1], [0, 0, 1, 1], [], []>} : vector<8x12xbf16>, vector<12x24xbf16>, vector<8x24xf32> -> vector<8x24xf32>
    %c0_58 = arith.constant 0 : index
    %c157 = arith.constant 157 : index
    %155 = vector.load %arg2[%c0_58, %c157] : memref<3x256xf32, #tpu.memory_space<vmem>>, vector<1x24xf32>
    %156 = vector.broadcast %155 : vector<1x24xf32> to vector<8x24xf32>
    %157 = arith.addf %154, %156 : vector<8x24xf32>
    %158 = arith.mulf %157, %157 : vector<8x24xf32>
    %159 = tpu.concatenate %157, %158 in 1 : vector<8x24xf32>, vector<8x24xf32> -> vector<8x48xf32>
    %cst_59 = arith.constant dense<0.000000e+00> : vector<48xf32>
    %160 = vector.multi_reduction <add>, %159, %cst_59 [0] : vector<8x48xf32> to vector<48xf32>
    %161 = vector.shape_cast %160 : vector<48xf32> to vector<1x48xf32>
    %cst_60 = arith.constant 1.250000e-01 : f32
    %162 = vector.broadcast %cst_60 : f32 to vector<1x48xf32>
    %163 = arith.mulf %161, %162 : vector<1x48xf32>
    %164 = vector.extract_strided_slice %163 {offsets = [0, 0], sizes = [1, 24], strides = [1, 1]} : vector<1x48xf32> to vector<1x24xf32>
    %165 = vector.extract_strided_slice %163 {offsets = [0, 24], sizes = [1, 24], strides = [1, 1]} : vector<1x48xf32> to vector<1x24xf32>
    %166 = arith.mulf %164, %164 : vector<1x24xf32>
    %167 = arith.subf %165, %166 : vector<1x24xf32>
    %cst_61 = arith.constant 0.000000e+00 : f32
    %168 = vector.broadcast %cst_61 : f32 to vector<1x24xf32>
    %169 = arith.maximumf %167, %168 : vector<1x24xf32>
    %170 = vector.broadcast %164 : vector<1x24xf32> to vector<8x24xf32>
    %171 = arith.subf %157, %170 : vector<8x24xf32>
    %cst_62 = arith.constant 9.99999974E-6 : f32
    %172 = vector.broadcast %cst_62 : f32 to vector<1x24xf32>
    %173 = arith.addf %169, %172 : vector<1x24xf32>
    %174 = math.rsqrt %173 : vector<1x24xf32>
    %175 = vector.broadcast %174 : vector<1x24xf32> to vector<8x24xf32>
    %176 = arith.mulf %171, %175 : vector<8x24xf32>
    %c1_63 = arith.constant 1 : index
    %c157_64 = arith.constant 157 : index
    %177 = vector.load %arg2[%c1_63, %c157_64] : memref<3x256xf32, #tpu.memory_space<vmem>>, vector<1x24xf32>
    %178 = vector.broadcast %177 : vector<1x24xf32> to vector<8x24xf32>
    %179 = arith.mulf %176, %178 : vector<8x24xf32>
    %c2_65 = arith.constant 2 : index
    %c157_66 = arith.constant 157 : index
    %180 = vector.load %arg2[%c2_65, %c157_66] : memref<3x256xf32, #tpu.memory_space<vmem>>, vector<1x24xf32>
    %181 = vector.broadcast %180 : vector<1x24xf32> to vector<8x24xf32>
    %182 = arith.addf %179, %181 : vector<8x24xf32>
    %cst_67 = arith.constant 0.000000e+00 : f32
    %183 = vector.broadcast %cst_67 : f32 to vector<8x24xf32>
    %184 = arith.maximumf %182, %183 : vector<8x24xf32>
    %185 = arith.truncf %184 : vector<8x24xf32> to vector<8x24xbf16>
    %c0_68 = arith.constant 0 : index
    %c176 = arith.constant 176 : index
    %186 = vector.load %arg1[%c0_68, %c176] : memref<64x256xbf16, #tpu.memory_space<vmem>>, vector<24x32xbf16>
    %cst_69 = arith.constant dense<0.000000e+00> : vector<8x32xf32>
    %187 = tpu.matmul %185, %186, %cst_69 {dimension_numbers = #tpu.dot_dimension_numbers<[1], [0], [0], [1], [0, 0, 1, 1], [], []>} : vector<8x24xbf16>, vector<24x32xbf16>, vector<8x32xf32> -> vector<8x32xf32>
    %c0_70 = arith.constant 0 : index
    %c181 = arith.constant 181 : index
    %188 = vector.load %arg2[%c0_70, %c181] : memref<3x256xf32, #tpu.memory_space<vmem>>, vector<1x32xf32>
    %189 = vector.broadcast %188 : vector<1x32xf32> to vector<8x32xf32>
    %190 = arith.addf %187, %189 : vector<8x32xf32>
    %191 = arith.negf %190 : vector<8x32xf32>
    %192 = math.exp %191 : vector<8x32xf32>
    %cst_71 = arith.constant 1.000000e+00 : f32
    %193 = vector.broadcast %cst_71 : f32 to vector<8x32xf32>
    %194 = arith.addf %193, %192 : vector<8x32xf32>
    %195 = arith.divf %193, %194 : vector<8x32xf32>
    %cst_72 = arith.constant 0.000000e+00 : f32
    %196 = vector.broadcast %cst_72 : f32 to vector<8x96xf32>
    %197 = tpu.concatenate %195, %196 in 1 : vector<8x32xf32>, vector<8x96xf32> -> vector<8x128xf32>
    %c0_73 = arith.constant 0 : index
    %c0_74 = arith.constant 0 : index
    %198 = vector.load %arg4[%c0_73, %c0_74] : memref<8x128xf32, #tpu.memory_space<vmem>>, vector<8x128xf32>
    tpu.vector_store %arg4[%c0_73, %c0_74], %197 {strides = array<i32>} : memref<8x128xf32, #tpu.memory_space<vmem>>, vector<8x128xf32>,
    return
  }
}

</mosaic_0001>

<bundles_post_ra>
// kernel: _fused_forward.1
= control target key start
LH: loop header
LB: loop body
LE: loop exit
PB: predicated region body
PF: predicated region fallthrough
CT: control target
= control target key end

     0   :  { %10 = vsyncpa [#allocation3], 0  ;;  %s1113_s0 = inlined_call_operand.hbm [shape: f32[8,32], index: 0, kind: input, shape index: {}]   ;;  %s1114_s1 = inlined_call_operand.hbm [shape: bf16[64,256], index: 1, kind: input, shape index: {}]   ;;  %s1115_s2 = inlined_call_operand.hbm [shape: f32[3,256], index: 2, kind: input, shape index: {}]   ;;  %s1116_s3 = inlined_call_operand.hbm [shape: f32[8,128], index: 3, kind: output, shape index: {0}]   ;;  %s1117_s4 = inlined_call_operand.hbm [shape: f32[8,128], index: 4, kind: output, shape index: {1}]  }
   0x1   :  { %11 = vsyncpa [#allocation6], 0 }
   0x2   :  { %12 = vsyncpa [#allocation4], 0  ;;  %s29_s17 = sshll.u32 %s1114_s1, 4  ;;  %s30_s17 = int_to_ptr.hbm [resolvable:$true] %s29_s17 }
   0x3   :  { %13 = vsyncpa [#allocation10], 0  ;;  %s973_s18 = smov [#allocation5]   ;;  %s19_s22 = sshll.u32 %s1113_s0, 4  ;;  %s20_s22 = int_to_ptr.hbm [resolvable:$true] %s19_s22 }
   0x4   :  { %s31_s19 = sshll.u32 %s973_s18, 4  ;;  %s974_s23 = smov 128   ;;  %s32_s19 = int_to_ptr.vmem [resolvable:$true] %s31_s19 }
   0x5   :  { %s975_s24 = smov 8   ;;  %s976_s25 = smov [#allocation2]  }
   0x6   :  { %37 = dma.hbm_to_vmem [thread:$0]  %s30_s17, 1024, %s32_s19, [#allocation6], %s974_s23, %s974_s23, %s975_s24  }
   0x7   :  { %s21_s26 = sshll.u32 %s976_s25, 4  ;;  %s43_s29 = sshll.u32 %s1115_s2, 4  ;;  %s22_s26 = int_to_ptr.vmem [resolvable:$true] %s21_s26  ;;  %s44_s29 = int_to_ptr.hbm [resolvable:$true] %s43_s29 }
   0x8   :  { %24 = dma.hbm_to_vmem [thread:$0]  %s20_s22, 128, %s22_s26, [#allocation3]  }
   0x9   :  { %s977_s1 = smov [#allocation7]  }
   0xa   :  { %s45_s30 = sshll.u32 %s977_s1, 4  ;;  %s46_s30 = int_to_ptr.vmem [resolvable:$true] %s45_s30 }
   0xb   :  { %48 = dma.hbm_to_vmem [thread:$0]  %s44_s29, 128, %s46_s30, [#allocation6]  }
   0xc   :  { %965 = dma.done.wait [#allocation3], 128  }
   0xd   :  { %966 = vsyncadd [#allocation3], 4294967168 }
   0xe   :  { %967 = dma.done.wait [#allocation6], 1152  }
   0xf   :  { %968 = vsyncadd [#allocation6], 4294966144  ;;  %v727_v0 = vld [vmem:[#allocation5 + $0x10] sm:$0xf]  ;;  %v782_v1 = vld [vmem:[#allocation5 + $0x14] sm:$0xf0] }
  0x10   :  { %v723_v2 = vld [vmem:[#allocation5] sm:$0xf]  ;;  %v728_v3 = vor.u32 %v782_v1, %v727_v0  ;;  %v781_v4 = vld [vmem:[#allocation5 + $0x4] sm:$0xf0]  ;;  %v62_v5 = vld [vmem:[#allocation2] sm:$0xff]  ;;  %vm82_vm0 = vcmask 261120  }
  0x11   :  { %v724_v6 = vor.u32 %v781_v4, %v723_v2  ;;  %v63_v7 = vpack.c.bf16 %v62_v5, %v62_v5  ;;  %v1033_v8 = vld [vmem:[#allocation7] ss:$0 sm:$0xff]  ;;  %s978_s0 = smov 24   ;;  %vm104_vm1 = vcmask 195584   ;;  %vm106_vm2 = vcmask 392192   ;;  %s979_s2 = smov 104  }
  0x12   :  { %92 = vmatpush.bf16.msra.mxu0 %v728_v3  ;;  %v732_v27 = vld [vmem:[#allocation5] sm:$0xf]  ;;  %v783_v28 = vld [vmem:[#allocation5 + $0x4] sm:$0xf0]  ;;  %v150_v38 = vld [vmem:[#allocation5 + $0x10] sm:$0xf] }
  0x13   :  { %v733_v29 = vor.u32 %v783_v28, %v732_v27  ;;  %v156_v40 = vunpack.c.l.b16 %v150_v38  ;;  %v821_v43 = vld [vmem:[#allocation7 + $0x1] ss:$0 sm:$0xff]  ;;  %v822_v46 = vld [vmem:[#allocation7 + $0x2] ss:$0 sm:$0xff]  ;;  %vm171_vm6 = vcmask 1043456   ;;  %s980_s5 = smov 12  }
  0x14   :  { %vm193_vm7 = vcmask 97280   ;;  %s981_s6 = smov 116   ;;  %s982_s7 = smov 92   ;;  %vm255_vm11 = vcmask 1045504   ;;  %vm287_vm12 = vcmask 97344   ;;  %vm280_vm13 = vcmask 64544  }
  0x15   :  { %159 = vrot.lane.b32.xlu2 %v733_v29, %s979_s2  ;;  %v158_v41 = vpack.c.b16 %v156_v40, %v156_v40  ;;  %vm274_vm14 = vcmask 31744   ;;  %s983_s8 = smov 76   ;;  %s984_s9 = smov 112   ;;  %vm315_vm15 = vcmask 130048  }
  0x16   :  { %93 = vmatpush.bf16.msra.mxu0 %v724_v6  ;;  %s985_s10 = smov 60   ;;  %s986_s11 = smov 120  }
  0x17   :  { %s987_s12 = smov 124   ;;  %s988_s13 = smov 64  }
  0x18   :  { %s989_s14 = smov 48   ;;  %s990_s15 = smov 52  }
  0x19   :  { %729 = vmatmul.msk.bf16.vlgmr.msra.gmra.mxu0 %vm82_vm0, %v63_v7  ;;  %s991_s17 = smov 47   ;;  %s992_s18 = smov 111  }
  0x1a   :  { %s993_s19 = smov 99   ;;  %s994_s20 = smov 80  }
  0x1b   :  { %s995_s21 = smov 75   ;;  %s694_s24 = sshll.u32 %s1116_s3, 4  ;;  %s695_s24 = int_to_ptr.hbm [resolvable:$true] %s694_s24 }
  0x1c   :  { %s996_s25 = smov [#allocation8]   ;;  %s997_s3 = smov [#allocation9]  }
  0x1d   :  { %165 = vrot.lane.b32.xlu2 %v1033_v8, %s979_s2  ;;  %s692_s26 = sshll.u32 %s996_s25, 4  ;;  %s703_s27 = sshll.u32 %s997_s3, 4  ;;  %s693_s26 = int_to_ptr.vmem [resolvable:$true] %s692_s26  ;;  %s704_s27 = int_to_ptr.vmem [resolvable:$true] %s703_s27 }
  0x1e   :  { %s705_s1 = sshll.u32 %s1117_s4, 4  ;;  %s706_s1 = int_to_ptr.hbm [resolvable:$true] %s705_s1 }
  0x6f   :  { %v160_v51 = vpop.permute.xlu2 %159 }
  0x77   :  { %v166_v54 = vpop.permute.xlu2 %165 }
  0x96   :  { %v95_v9 = vpop.f32.mrf.mxu0 }
  0x97   :  { %v96_v10 = vadd.f32 %v1033_v8, %v95_v9 }
  0x99   :  { %v99_v11 = vmul.f32 %v96_v10, %v96_v10 }
  0x9b   :  { %101 = vrot.lane.b32.xlu0 %v99_v11, %s978_s0 }
  0x9e   :  { %v97_v12 = vpop.f32.mrf.mxu0 }
 0x10d   :  { %v102_v13 = vpop.permute.xlu0 %101 }
 0x10e   :  { %v105_v14 = vsel %vm104_vm1, %v96_v10, %v102_v13 }
 0x10f   :  { %v107_v15 = vsel %vm106_vm2, %v105_v14, 0.0 }
 0x110   :  { %v108_v16 = vrot.slane %v107_v15, 4 }
 0x112   :  { %v109_v17 = vadd.f32 %v108_v16, %v107_v15 }
 0x114   :  { %v110_v18 = vrot.slane %v109_v17, 2 }
 0x116   :  { %v111_v19 = vadd.f32 %v110_v18, %v109_v17  ;;  %v240_v18 = vld [vmem:[#allocation5] sm:$0xf] }
 0x118   :  { %v112_v20 = vrot.slane %v111_v19, 1 }
 0x11a   :  { %v113_v21 = vadd.f32 %v112_v20, %v111_v19  ;;  %v241_v19 = vld [vmem:[#allocation5 + $0x8] sm:$0x3] }
 0x11c   :  { %v114_v22 = vmul.f32 0.125, %v113_v21  ;;  %v244_v21 = vunpack.c.l.b16 %v240_v18 }
 0x11e   :  { %v115_v23 = vmul.f32 %v114_v22, %v114_v22  ;;  %v122_v42 = vsub.f32 %v96_v10, %v114_v22 }
 0x120   :  { %117 = vrot.lane.b32.xlu0 %v115_v23, %s978_s0 }
 0x192   :  { %v118_v24 = vpop.permute.xlu0 %117 }
 0x193   :  { %v120_v25 = vsub.f32 %v114_v22, %v118_v24  ;;  %v245_v22 = vunpack.c.l.b16 %v241_v19 }
 0x195   :  { %v121_v26 = vmax.f32 %v120_v25, 0.0  ;;  %v246_v23 = vpack.c.b16 %v245_v22, %v244_v21 }
 0x197   :  { %v123_v30 = vadd.f32 1e-05, %v121_v26 }
 0x199   :  { %827 = vrsqrt.f32 %v123_v30  ;;  %vm130_vm4 = vweird.f32 %v123_v30 }
 0x19f   :  { %v828_v31 = vpop.eup %827 }
 0x1a0   :  { %v125_v32 = vmul.f32 %v828_v31, %v123_v30  ;;  %vm131_vm3 = vweird.f32 %v828_v31 }
 0x1a1   :  { %vm132_vm5 = vmor %vm130_vm4, %vm131_vm3 }
 0x1a2   :  { %v126_v33 = vmul.f32 %v828_v31, %v125_v32 }
 0x1a4   :  { %v127_v34 = vmul.f32 0.5, %v126_v33 }
 0x1a6   :  { %v128_v35 = vsub.f32 1.5, %v127_v34 }
 0x1a8   :  { %v129_v36 = vmul.f32 %v828_v31, %v128_v35 }
 0x1aa   :  { %v133_v37 = vsel %vm132_vm5, %v828_v31, %v129_v36 }
 0x1ab   :  { %v134_v39 = vperm.slane %v133_v37, 0 }
 0x1ad   :  { %136 = vrot.lane.b32.xlu1 %v134_v39, %s979_s2  ;;  %v305_v39 = vld [vmem:[#allocation5 + $0x8] sm:$0xf] }
 0x1ae   :  { %v307_v40 = vunpack.c.l.b16 %v305_v39 }
 0x1b5   :  { %161 = vrot.lane.b32.xlu1 %v158_v41, %s979_s2  ;;  %v308_v41 = vpack.c.b16 %v307_v40, %v244_v21  ;;  %v784_v21 = vld [vmem:[#allocation5 + $0x4] sm:$0xf0] }
 0x21f   :  { %v137_v44 = vpop.permute.xlu1 %136 }
 0x220   :  { %v139_v45 = vmul.f32 %v137_v44, %v122_v42  ;;  %v273_v42 = vld [vmem:[#allocation7] sm:$0x7] }
 0x221   :  { %v278_v44 = vperm.slane %v273_v42, 0 }
 0x222   :  { %v142_v47 = vmul.f32 %v821_v43, %v139_v45 }
 0x224   :  { %v145_v48 = vadd.f32 %v822_v46, %v142_v47 }
 0x226   :  { %v146_v52 = vmax.f32 %v145_v48, 0.0 }
 0x227   :  { %v162_v49 = vpop.permute.xlu1 %161 }
 0x228   :  { %v173_v50 = vsel %vm171_vm6, %v162_v49, 0  ;;  %v147_v53 = vpack.c.bf16 %v146_v52, %v146_v52 }
 0x229   :  { %181 = vmatpush.bf16.msra.mxu1 %v173_v50 }
 0x22d   :  { %182 = vmatpush.bf16.msra.mxu1 %v160_v51 }
 0x230   :  { %734 = vmatmul.msk.bf16.vlgmr.msra.gmra.mxu1 %vm104_vm1, %v147_v53 }
 0x2ad   :  { %v184_v55 = vpop.f32.mrf.mxu1 }
 0x2ae   :  { %v185_v56 = vadd.f32 %v184_v55, %v166_v54 }
 0x2b0   :  { %v188_v57 = vmul.f32 %v185_v56, %v185_v56 }
 0x2b2   :  { %190 = vrot.lane.b32.xlu0 %v188_v57, %s980_s5 }
 0x2b5   :  { %v186_v58 = vpop.f32.mrf.mxu1 }
 0x2ba   :  { %229 = vrot.lane.b32.xlu0 %v821_v43, %s979_s2  ;;  %v284_v43 = vperm.slane %v273_v42, 1 }
 0x324   :  { %v191_v59 = vpop.permute.xlu0 %190 }
 0x325   :  { %v194_v60 = vsel %vm193_vm7, %v185_v56, %v191_v59 }
 0x326   :  { %v195_v61 = vsel %vm104_vm1, %v194_v60, 0.0 }
 0x327   :  { %v196_v62 = vrot.slane %v195_v61, 4 }
 0x329   :  { %v197_v63 = vadd.f32 %v196_v62, %v195_v61 }
 0x32b   :  { %v198_v0 = vrot.slane %v197_v63, 2 }
 0x32c   :  { %v230_v26 = vpop.permute.xlu0 %229 }
 0x32d   :  { %v199_v1 = vadd.f32 %v198_v0, %v197_v63 }
 0x32f   :  { %v200_v2 = vrot.slane %v199_v1, 1 }
 0x331   :  { %v201_v3 = vadd.f32 %v200_v2, %v199_v1 }
 0x333   :  { %v202_v4 = vmul.f32 0.125, %v201_v3 }
 0x335   :  { %v203_v5 = vmul.f32 %v202_v4, %v202_v4  ;;  %v210_v24 = vsub.f32 %v185_v56, %v202_v4 }
 0x337   :  { %205 = vrot.lane.b32.xlu1 %v203_v5, %s980_s5 }
 0x33f   :  { %234 = vrot.lane.b32.xlu1 %v822_v46, %s979_s2  ;;  %v291_v46 = vperm.slane %v273_v42, 2 }
 0x3a9   :  { %v206_v6 = vpop.permute.xlu1 %205 }
 0x3aa   :  { %v208_v7 = vsub.f32 %v202_v4, %v206_v6 }
 0x3ac   :  { %v209_v9 = vmax.f32 %v208_v7, 0.0 }
 0x3ae   :  { %v211_v10 = vadd.f32 1e-05, %v209_v9 }
 0x3b0   :  { %829 = vrsqrt.f32 %v211_v10  ;;  %vm218_vm9 = vweird.f32 %v211_v10 }
 0x3b1   :  { %v235_v28 = vpop.permute.xlu1 %234 }
 0x3b6   :  { %v830_v11 = vpop.eup %829 }
 0x3b7   :  { %v213_v12 = vmul.f32 %v830_v11, %v211_v10  ;;  %vm219_vm8 = vweird.f32 %v830_v11 }
 0x3b8   :  { %vm220_vm10 = vmor %vm218_vm9, %vm219_vm8  ;;  %vm446_vm9 = vcmask 424960  }
 0x3b9   :  { %v214_v13 = vmul.f32 %v830_v11, %v213_v12 }
 0x3bb   :  { %v215_v14 = vmul.f32 0.5, %v214_v13 }
 0x3bd   :  { %v216_v15 = vsub.f32 1.5, %v215_v14 }
 0x3bf   :  { %v217_v16 = vmul.f32 %v830_v11, %v216_v15 }
 0x3c1   :  { %v221_v17 = vsel %vm220_vm10, %v830_v11, %v217_v16 }
 0x3c2   :  { %v222_v20 = vperm.slane %v221_v17, 0 }
 0x3c4   :  { %224 = vrot.lane.b32.xlu2 %v222_v20, %s981_s6  ;;  %v740_v20 = vld [vmem:[#allocation5] sm:$0xf] }
 0x3c5   :  { %v741_v22 = vor.u32 %v784_v21, %v740_v20  ;;  %v1088_v21 = vld [vmem:[#allocation7 + $0x4] ss:$0 sm:$0xff] }
 0x3cc   :  { %247 = vrot.lane.b32.xlu2 %v246_v23, %s982_s7  ;;  %v823_v23 = vld [vmem:[#allocation7] ss:$0 sm:$0xff] }
 0x41e   :  { %v225_v25 = vpop.permute.xlu2 %224 }
 0x41f   :  { %v227_v27 = vmul.f32 %v225_v25, %v210_v24 }
 0x421   :  { %v232_v29 = vmul.f32 %v230_v26, %v227_v27 }
 0x423   :  { %v237_v30 = vadd.f32 %v235_v28, %v232_v29  ;;  %v785_v29 = vld [vmem:[#allocation5 + $0x4] sm:$0xf] }
 0x425   :  { %v1055_v31 = vmax.f32 %v237_v30, 0.0  ;;  %v748_v30 = vld [vmem:[#allocation5 + $0x8] sm:$0x30] }
 0x426   :  { %v248_v32 = vpop.permute.xlu2 %247 }
 0x427   :  { %v257_v33 = vsel %vm255_vm11, %v248_v32, 0  ;;  %v288_v34 = vsel %vm287_vm12, %v1055_v31, -inf  ;;  %v281_v35 = vsel %vm280_vm13, %v1055_v31, -inf  ;;  %v275_v36 = vsel %vm274_vm14, %v1055_v31, -inf }
 0x428   :  { %266 = vmatpush.bf16.msra.mxu2 %v257_v33  ;;  %289 = vmax.xlane.f32.xlu2 %v288_v34  ;;  %v352_v37 = vsel %vm193_vm7, %v1055_v31, 0.0  ;;  %v239_v38 = vpack.c.bf16 %v1055_v31, %v1055_v31  ;;  %v751_v32 = vor.u32 %v785_v29, %v748_v30  ;;  %v786_v33 = vld [vmem:[#allocation5 + $0x4] sm:$0x30] }
 0x429   :  { %282 = vmax.xlane.f32.xlu1 %v281_v35  ;;  %276 = vmax.xlane.f32.xlu0 %v275_v36  ;;  %353 = vst [vmem:[#allocation8] sm:$0xff] %v352_v37 }
 0x42a   :  { %697 = dma.vmem_to_hbm [thread:$0]  %s693_s26, 128, %s695_s24, [#allocation4]  }
 0x42b   :  { %735 = vmatmul.msk.bf16.vlgmr.msra.gmra.mxu2 %vm193_vm7, %v239_v38 }
 0x43d   :  { %249 = vrot.lane.b32.xlu0 %v1033_v8, %s983_s8 }
 0x440   :  { %294 = vrot.lane.b32.xlu2 %v1033_v8, %s984_s9 }
 0x445   :  { %309 = vrot.lane.b32.xlu0 %v308_v41, %s983_s8 }
 0x448   :  { %312 = vrot.lane.b32.xlu2 %v1033_v8, %s985_s10 }
 0x49b   :  { %v290_v45 = vpop.xlane.xlu2 %289 }
 0x49c   :  { %v283_v47 = vpop.xlane.xlu1 %282  ;;  %v277_v48 = vpop.xlane.xlu0 %276  ;;  %v292_v52 = vmul.f32 %v291_v46, %v290_v45 }
 0x49d   :  { %v285_v49 = vmul.f32 %v284_v43, %v283_v47  ;;  %v279_v50 = vmul.f32 %v278_v44, %v277_v48  ;;  %v767_v47 = vld [vmem:[#allocation5 + $0x34] sm:$0xf]  ;;  %v790_v48 = vld [vmem:[#allocation5 + $0x38] sm:$0xf0] }
 0x49f   :  { %v286_v51 = vadd.f32 %v285_v49, %v279_v50  ;;  %v768_v49 = vor.u32 %v790_v48, %v767_v47  ;;  %v426_v50 = vld [vmem:[#allocation7] sm:$0x11] }
 0x4a1   :  { %v293_v53 = vadd.f32 %v292_v52, %v286_v51  ;;  %v428_v51 = vperm.slane %v426_v50, 0  ;;  %v763_v52 = vld [vmem:[#allocation5 + $0x24] sm:$0xf] }
 0x4a3   :  { %v295_v54 = vpop.permute.xlu2 %294 }
 0x4a4   :  { %v297_v55 = vadd.f32 %v295_v54, %v293_v53  ;;  %v789_v53 = vld [vmem:[#allocation5 + $0x28] sm:$0xf0]  ;;  %v429_v54 = vperm.slane %v426_v50, 4 }
 0x4a6   :  { %v298_v56 = vmax.f32 %v297_v55, 0.0  ;;  %v764_v55 = vor.u32 %v789_v53, %v763_v52 }
 0x4a8   :  { %300 = vrot.lane.b32.xlu1 %v298_v56, %s982_s7  ;;  %v432_v56 = vperm.slane %v428_v51, 0 }
 0x4ab   :  { %v313_v8 = vpop.permute.xlu2 %312 }
 0x4ae   :  { %v268_v57 = vpop.f32.mrf.mxu2 }
 0x4af   :  { %v250_v59 = vpop.permute.xlu0 %249 }
 0x4b0   :  { %v269_v61 = vadd.f32 %v268_v57, %v250_v59  ;;  %v788_v59 = vld [vmem:[#allocation5 + $0x18] sm:$0xf0] }
 0x4b2   :  { %v272_v62 = vmax.f32 %v269_v61, 0.0  ;;  %v755_v61 = vld [vmem:[#allocation5 + $0x4] sm:$0xf] }
 0x4b6   :  { %v270_v58 = vpop.f32.mrf.mxu2 }
 0x4b7   :  { %v310_v60 = vpop.permute.xlu0 %309  ;;  %v759_v58 = vld [vmem:[#allocation5 + $0x14] sm:$0xf] }
 0x4b8   :  { %326 = vmatpush.bf16.msra.mxu3 %v310_v60  ;;  %v433_v60 = vperm.slane %v429_v54, 0  ;;  %v825_v54 = vld [vmem:[#allocation7 + $0x5] ss:$0 sm:$0xff] }
 0x51a   :  { %v301_v63 = vpop.permute.xlu1 %300 }
 0x51b   :  { %v303_v0 = vadd.f32 %v301_v63, %v272_v62  ;;  %v787_v62 = vld [vmem:[#allocation5 + $0x8] sm:$0xf0] }
 0x51d   :  { %v304_v1 = vpack.c.bf16 %v303_v0, %v303_v0 }
 0x51f   :  { %736 = vmatmul.msk.bf16.vlgmr.msra.gmra.mxu3 %vm315_vm15, %v304_v1  ;;  %v760_v1 = vor.u32 %v788_v59, %v759_v58 }
 0x5a2   :  { %v328_v2 = vpop.f32.mrf.mxu3 }
 0x5a3   :  { %v329_v3 = vadd.f32 %v328_v2, %v313_v8  ;;  %v756_v8 = vor.u32 %v787_v62, %v755_v61  ;;  %v630_v61 = vld [vmem:[#allocation5 + $0x14] sm:$0xf] }
 0x5a4   :  { %v636_v62 = vunpack.c.l.b16 %v630_v61 }
 0x5a5   :  { %v737_v4 = vmul.f32 -1.442695, %v329_v3 }
 0x5a7   :  { %831 = vpow2.f32 %v737_v4 }
 0x5aa   :  { %v330_v5 = vpop.f32.mrf.mxu3 }
 0x5ad   :  { %v832_v6 = vpop.eup %831 }
 0x5ae   :  { %v335_v7 = vadd.f32 1.0, %v832_v6 }
 0x5b0   :  { %833 = vrcp.f32 %v335_v7  ;;  %v347_v12 = vand.u32 2147483648, %v335_v7  ;;  %v345_v14 = vand.u32 2147483647, %v335_v7  ;;  %vm341_vm4 = vweird.f32 %v335_v7 }
 0x5b2   :  { %v348_v16 = vor.u32 1.1754944e-38, %v347_v12  ;;  %vm346_vm8 = vcmp.eq.f32.partialorder %v345_v14, 8.507059e+37 }
 0x5b6   :  { %v834_v9 = vpop.eup %833 }
 0x5b7   :  { %v337_v10 = vmul.f32 %v834_v9, %v335_v7  ;;  %vm342_vm3 = vweird.f32 %v834_v9 }
 0x5b8   :  { %vm343_vm5 = vmor %vm341_vm4, %vm342_vm3  ;;  %vm524_vm3 = vcmask 523264  }
 0x5b9   :  { %v338_v11 = vsub.f32 1.0, %v337_v10 }
 0x5bb   :  { %v339_v13 = vmul.f32 %v834_v9, %v338_v11 }
 0x5bd   :  { %v340_v15 = vadd.f32 %v834_v9, %v339_v13 }
 0x5bf   :  { %v344_v17 = vsel %vm343_vm5, %v834_v9, %v340_v15 }
 0x5c0   :  { %v349_v18 = vsel %vm346_vm8, %v348_v16, %v344_v17 }
 0x5c1   :  { %v1072_v19 = vmul.f32 %v349_v18, %v1055_v31  ;;  %v746_v31 = vld [vmem:[#allocation5] sm:$0xf] }
 0x5c2   :  { %v747_v34 = vor.u32 %v786_v33, %v746_v31 }
 0x5c3   :  { %359 = vrot.lane.b32.xlu0 %v1072_v19, %s986_s11  ;;  %355 = vrot.lane.b32.xlu1 %v1072_v19, %s987_s12 }
 0x5cb   :  { %384 = vrot.lane.b32.xlu1 %v741_v22, %s988_s13  ;;  %374 = vrot.lane.b32.xlu0 %v823_v23, %s989_s14  ;;  %v772_v22 = vld [vmem:[#allocation5 + $0x4] sm:$0xf]  ;;  %v791_v23 = vld [vmem:[#allocation5 + $0x8] sm:$0x30] }
 0x5d3   :  { %444 = vrot.lane.b32.xlu1 %v751_v32, %s990_s15  ;;  %514 = vrot.lane.b32.xlu0 %v768_v49, %s981_s6 }
 0x5db   :  { %450 = vrot.lane.b32.xlu1 %v432_v56, %s991_s17  ;;  %452 = vrot.lane.b32.xlu0 %v433_v60, %s991_s17  ;;  %v792_v56 = vld [vmem:[#allocation5 + $0x8] sm:$0xf0] }
 0x5e3   :  { %508 = vrot.lane.b32.xlu1 %v756_v8, %s981_s6  ;;  %521 = vrot.lane.b32.xlu0 %v1088_v21, %s992_s18 }
 0x5eb   :  { %551 = vrot.lane.b32.xlu1 %v1088_v21, %s993_s19 }
 0x635   :  { %v356_v24 = vpop.permute.xlu1 %355  ;;  %v360_v26 = vpop.permute.xlu0 %359 }
 0x636   :  { %v358_v25 = vmax.f32 %v1072_v19, %v356_v24  ;;  %v773_v24 = vor.u32 %v791_v23, %v772_v22 }
 0x638   :  { %v362_v27 = vmax.f32 %v358_v25, %v360_v26 }
 0x63a   :  { %364 = vrot.lane.b32.xlu2 %v362_v27, %s980_s5 }
 0x63d   :  { %v385_v28 = vpop.permute.xlu1 %384  ;;  %v375_v35 = vpop.permute.xlu0 %374 }
 0x63e   :  { %397 = vmatpush.bf16.msrb.mxu2 %v385_v28  ;;  %793 = vpush %v375_v35 }
 0x642   :  { %442 = vrot.lane.b32.xlu2 %v747_v34, %s990_s15 }
 0x645   :  { %v445_v40 = vpop.permute.xlu1 %444  ;;  %v515_v16 = vpop.permute.xlu0 %514 }
 0x646   :  { %532 = vmatpush.bf16.msrb.mxu0 %v515_v16 }
 0x64a   :  { %512 = vrot.lane.b32.xlu2 %v764_v55, %s981_s6  ;;  %v777_v55 = vld [vmem:[#allocation5 + $0x4] sm:$0xf] }
 0x64d   :  { %v451_v18 = vpop.permute.xlu1 %450 }
 0x652   :  { %510 = vrot.lane.b32.xlu2 %v760_v1, %s981_s6 }
 0x655   :  { %v509_v20 = vpop.permute.xlu1 %508 }
 0x65a   :  { %549 = vrot.lane.b32.xlu2 %v773_v24, %s979_s2 }
 0x66f   :  { %s794_s16 = spop %793 }
 0x670   :  { %v377_v43 = vstv %s794_s16 }
 0x694   :  { %v365_v36 = vpop.permute.xlu2 %364 }
 0x695   :  { %v367_v37 = vsel %vm193_vm7, %v1072_v19, %v365_v36 }
 0x696   :  { %v368_v38 = vpack.c.bf16 %v367_v37, %v367_v37 }
 0x698   :  { %742 = vmatmul.msk.bf16.vlgmr.msrb.gmra.mxu2 %vm315_vm15, %v368_v38  ;;  %vm454_vm15 = vcmask 384000   ;;  %v552_v38 = vpop.permute.xlu1 %551 }
 0x69c   :  { %v443_v39 = vpop.permute.xlu2 %442 }
 0x69d   :  { %v447_v41 = vsel %vm446_vm9, %v443_v39, %v445_v40 }
 0x69e   :  { %v461_v42 = vsel %vm255_vm11, %v447_v41, 0 }
 0x69f   :  { %470 = vmatpush.bf16.msrb.mxu3 %v461_v42 }
 0x6a4   :  { %v513_v15 = vpop.permute.xlu2 %512 }
 0x6a5   :  { %533 = vmatpush.bf16.msrb.mxu0 %v513_v15 }
 0x6ac   :  { %v511_v17 = vpop.permute.xlu2 %510 }
 0x6ad   :  { %534 = vmatpush.bf16.msrb.mxu0 %v511_v17 }
 0x6b1   :  { %535 = vmatpush.bf16.msrb.mxu0 %v509_v20 }
 0x6b4   :  { %v550_v31 = vpop.permute.xlu2 %549 }
 0x6b5   :  { %v558_v32 = vsel %vm255_vm11, %v550_v31, 0 }
 0x6b6   :  { %567 = vmatpush.bf16.msrb.mxu1 %v558_v32 }
 0x71b   :  { %v399_v44 = vpop.f32.mrf.mxu2 }
 0x71c   :  { %v400_v45 = vadd.f32 %v399_v44, %v377_v43 }
 0x71e   :  { %v743_v46 = vmul.f32 -1.442695, %v400_v45 }
 0x720   :  { %835 = vpow2.f32 %v743_v46 }
 0x723   :  { %v401_v57 = vpop.f32.mrf.mxu2 }
 0x724   :  { %v778_v57 = vor.u32 %v792_v56, %v777_v55 }
 0x726   :  { %v836_v63 = vpop.eup %835 }
 0x727   :  { %v406_v0 = vadd.f32 1.0, %v836_v63 }
 0x729   :  { %837 = vrcp.f32 %v406_v0  ;;  %v418_v5 = vand.u32 2147483648, %v406_v0  ;;  %v416_v7 = vand.u32 2147483647, %v406_v0  ;;  %vm412_vm12 = vweird.f32 %v406_v0 }
 0x72b   :  { %v419_v10 = vor.u32 1.1754944e-38, %v418_v5  ;;  %vm417_vm14 = vcmp.eq.f32.partialorder %v416_v7, 8.507059e+37 }
 0x72f   :  { %v838_v2 = vpop.eup %837 }
 0x730   :  { %v408_v3 = vmul.f32 %v838_v2, %v406_v0  ;;  %vm413_vm10 = vweird.f32 %v838_v2  ;;  %v638_v0 = vpack.c.b16 %v636_v62, %v636_v62 }
 0x731   :  { %vm414_vm13 = vmor %vm412_vm12, %vm413_vm10 }
 0x732   :  { %v409_v4 = vsub.f32 1.0, %v408_v3 }
 0x734   :  { %v410_v6 = vmul.f32 %v838_v2, %v409_v4 }
 0x736   :  { %v411_v9 = vadd.f32 %v838_v2, %v410_v6 }
 0x738   :  { %v415_v11 = vsel %vm414_vm13, %v838_v2, %v411_v9  ;;  %v826_v9 = vld [vmem:[#allocation7 + $0x6] ss:$0 sm:$0xff] }
 0x739   :  { %v420_v12 = vsel %vm417_vm14, %v419_v10, %v415_v11 }
 0x73a   :  { %v422_v13 = vmul.f32 %v420_v12, %v1072_v19  ;;  %v453_v19 = vpop.permute.xlu0 %452 }
 0x73b   :  { %v455_v25 = vsel %vm454_vm15, %v451_v18, %v453_v19 }
 0x73c   :  { %v423_v14 = vpack.c.bf16 %v422_v13, %v422_v13 }
 0x73e   :  { %752 = vmatmul.msk.bf16.vlgmr.msrb.gmra.mxu3 %vm193_vm7, %v423_v14 }
 0x742   :  { %v522_v33 = vpop.permute.xlu0 %521 }
 0x7c1   :  { %v472_v26 = vpop.f32.mrf.mxu3 }
 0x7c2   :  { %v473_v27 = vadd.f32 %v472_v26, %v455_v25 }
 0x7c4   :  { %v476_v28 = vmax.f32 %v473_v27, 0.0 }
 0x7c6   :  { %v477_v29 = vpack.c.bf16 %v476_v28, %v476_v28 }
 0x7c8   :  { %769 = vmatmul.msk.bf16.vlgmr.msrb.gmra.mxu0 %vm524_vm3, %v477_v29 }
 0x7c9   :  { %v474_v30 = vpop.f32.mrf.mxu3 }
 0x845   :  { %v537_v34 = vpop.f32.mrf.mxu0 }
 0x846   :  { %v538_v35 = vadd.f32 %v537_v34, %v522_v33 }
 0x848   :  { %v541_v36 = vpack.c.bf16 %v538_v35, %v538_v35 }
 0x84a   :  { %774 = vmatmul.msk.bf16.vlgmr.msrb.gmra.mxu1 %vm193_vm7, %v541_v36 }
 0x84d   :  { %v539_v37 = vpop.f32.mrf.mxu0 }
 0x8c7   :  { %v569_v39 = vpop.f32.mrf.mxu1 }
 0x8c8   :  { %v570_v40 = vadd.f32 %v569_v39, %v552_v38 }
 0x8ca   :  { %v573_v41 = vmul.f32 %v570_v40, %v570_v40 }
 0x8cc   :  { %575 = vrot.lane.b32.xlu0 %v573_v41, %s978_s0 }
 0x8cf   :  { %v571_v42 = vpop.f32.mrf.mxu1 }
 0x8d4   :  { %615 = vrot.lane.b32.xlu0 %v825_v54, %s993_s19 }
 0x8dc   :  { %639 = vrot.lane.b32.xlu0 %v778_v57, %s994_s20 }
 0x93e   :  { %v576_v43 = vpop.permute.xlu0 %575 }
 0x93f   :  { %v578_v44 = vsel %vm104_vm1, %v570_v40, %v576_v43 }
 0x940   :  { %v579_v45 = vsel %vm106_vm2, %v578_v44, 0.0 }
 0x941   :  { %v580_v46 = vrot.slane %v579_v45, 4 }
 0x943   :  { %v581_v47 = vadd.f32 %v580_v46, %v579_v45 }
 0x945   :  { %v582_v48 = vrot.slane %v581_v47, 2 }
 0x946   :  { %v616_v12 = vpop.permute.xlu0 %615 }
 0x947   :  { %v583_v49 = vadd.f32 %v582_v48, %v581_v47 }
 0x949   :  { %v584_v50 = vrot.slane %v583_v49, 1 }
 0x94b   :  { %v585_v51 = vadd.f32 %v584_v50, %v583_v49 }
 0x94d   :  { %v586_v52 = vmul.f32 0.125, %v585_v51 }
 0x94e   :  { %v640_v13 = vpop.permute.xlu0 %639 }
 0x94f   :  { %v587_v53 = vmul.f32 %v586_v52, %v586_v52  ;;  %v594_v15 = vsub.f32 %v570_v40, %v586_v52 }
 0x951   :  { %589 = vrot.lane.b32.xlu2 %v587_v53, %s978_s0 }
 0x959   :  { %641 = vrot.lane.b32.xlu2 %v638_v0, %s994_s20 }
 0x961   :  { %644 = vrot.lane.b32.xlu2 %v1088_v21, %s995_s21 }
 0x9ab   :  { %v590_v58 = vpop.permute.xlu2 %589 }
 0x9ac   :  { %v592_v59 = vsub.f32 %v586_v52, %v590_v58 }
 0x9ae   :  { %v593_v60 = vmax.f32 %v592_v59, 0.0 }
 0x9b0   :  { %v595_v63 = vadd.f32 1e-05, %v593_v60 }
 0x9b2   :  { %839 = vrsqrt.f32 %v595_v63  ;;  %vm602_vm7 = vweird.f32 %v595_v63 }
 0x9b3   :  { %v642_v10 = vpop.permute.xlu2 %641 }
 0x9b4   :  { %v651_v11 = vsel %vm171_vm6, %v642_v10, 0 }
 0x9b5   :  { %659 = vmatpush.bf16.msra.mxu2 %v651_v11 }
 0x9b8   :  { %v840_v1 = vpop.eup %839 }
 0x9b9   :  { %v597_v8 = vmul.f32 %v840_v1, %v595_v63  ;;  %vm603_vm2 = vweird.f32 %v840_v1  ;;  %660 = vmatpush.bf16.msra.mxu2 %v640_v13 }
 0x9ba   :  { %vm604_vm11 = vmor %vm602_vm7, %vm603_vm2 }
 0x9bb   :  { %v598_v2 = vmul.f32 %v840_v1, %v597_v8  ;;  %v645_v21 = vpop.permute.xlu2 %644 }
 0x9bd   :  { %v599_v3 = vmul.f32 0.5, %v598_v2 }
 0x9bf   :  { %v600_v4 = vsub.f32 1.5, %v599_v3 }
 0x9c1   :  { %v601_v5 = vmul.f32 %v840_v1, %v600_v4 }
 0x9c3   :  { %v605_v6 = vsel %vm604_vm11, %v840_v1, %v601_v5 }
 0x9c4   :  { %v606_v7 = vperm.slane %v605_v6, 0 }
 0x9c6   :  { %608 = vrot.lane.b32.xlu1 %v606_v7, %s979_s2 }
 0x9ce   :  { %622 = vrot.lane.b32.xlu1 %v826_v9, %s993_s19 }
 0xa38   :  { %v609_v14 = vpop.permute.xlu1 %608 }
 0xa39   :  { %v611_v16 = vmul.f32 %v609_v14, %v594_v15 }
 0xa3b   :  { %v618_v17 = vmul.f32 %v616_v12, %v611_v16 }
 0xa40   :  { %v623_v18 = vpop.permute.xlu1 %622 }
 0xa41   :  { %v625_v20 = vadd.f32 %v623_v18, %v618_v17 }
 0xa43   :  { %v626_v22 = vmax.f32 %v625_v20, 0.0 }
 0xa45   :  { %v627_v23 = vpack.c.bf16 %v626_v22, %v626_v22 }
 0xa47   :  { %779 = vmatmul.msk.bf16.vlgmr.msra.gmra.mxu2 %vm104_vm1, %v627_v23 }
 0xaca   :  { %v662_v24 = vpop.f32.mrf.mxu2 }
 0xacb   :  { %v663_v19 = vadd.f32 %v662_v24, %v645_v21 }
 0xacd   :  { %v780_v25 = vmul.f32 -1.442695, %v663_v19 }
 0xacf   :  { %841 = vpow2.f32 %v780_v25 }
 0xad2   :  { %v664_v26 = vpop.f32.mrf.mxu2 }
 0xad5   :  { %v842_v27 = vpop.eup %841 }
 0xad6   :  { %v669_v28 = vadd.f32 1.0, %v842_v27 }
 0xad8   :  { %843 = vrcp.f32 %v669_v28  ;;  %v681_v32 = vand.u32 2147483648, %v669_v28  ;;  %v679_v34 = vand.u32 2147483647, %v669_v28  ;;  %vm675_vm6 = vweird.f32 %v669_v28 }
 0xada   :  { %v682_v36 = vor.u32 1.1754944e-38, %v681_v32  ;;  %vm680_vm5 = vcmp.eq.f32.partialorder %v679_v34, 8.507059e+37 }
 0xade   :  { %v844_v29 = vpop.eup %843 }
 0xadf   :  { %v671_v30 = vmul.f32 %v844_v29, %v669_v28  ;;  %vm676_vm1 = vweird.f32 %v844_v29 }
 0xae0   :  { %vm677_vm4 = vmor %vm675_vm6, %vm676_vm1 }
 0xae1   :  { %v672_v31 = vsub.f32 1.0, %v671_v30 }
 0xae3   :  { %v673_v33 = vmul.f32 %v844_v29, %v672_v31 }
 0xae5   :  { %v674_v35 = vadd.f32 %v844_v29, %v673_v33 }
 0xae7   :  { %v678_v37 = vsel %vm677_vm4, %v844_v29, %v674_v35 }
 0xae8   :  { %v683_v38 = vsel %vm680_vm5, %v682_v36, %v678_v37 }
 0xae9   :  { %v685_v39 = vsel %vm82_vm0, %v683_v38, 0.0 }
 0xaea   :  { %686 = vst [vmem:[#allocation9] sm:$0xff] %v685_v39 }
 0xaeb   :  { %708 = dma.vmem_to_hbm [thread:$0]  %s704_s27, 128, %s706_s1, [#allocation10]  }
 0xaec   :  { %969 = dma.done.wait [#allocation4], 128  }
 0xaed   :  { %970 = vsyncadd [#allocation4], 4294967168 }
 0xaee   :  { %971 = dma.done.wait [#allocation10], 128  }
 0xaef   :  { %972 = vsyncadd [#allocation10], 4294967168 }
 0xaf0   :  { %717 = vsyncpa [#allocation3], 1 }
 0xaf1   :  { %718 = vsyncpa [#allocation6], 1 }
 0xaf2   :  { %719 = vsyncpa [#allocation4], 1 }
 0xaf3   :  { %720 = vsyncpa [#allocation10], 1 }

</bundles_post_ra>
